<compile_context>
chip_gen: v7x
topology: tpu7x:2x2x1
jax: 0.10.0
libtpu: 0.0.40
codegen_flags: <defaults>
</compile_context>

<pallas_src>
import math

import jax
import jax.numpy as jnp
from jax.experimental import pallas as pl
from jax.experimental.pallas import tpu as pltpu


def _round_up(x, m):
    return (x + m - 1) // m * m


def _choose_group(d_model, M):
    """Pick row-group size G with (G * d_model) % 128 == 0 (lane-dense output).

    Grows G (denser x lanes, wider output slab) while it still divides M (no pad
    op needed) and keeps the block-diagonal weight / per-group row count sane.
    Returns (G, G_min); G > G_min only when M % G == 0.
    """
    g_min = 128 // math.gcd(d_model, 128)   # minimal lane-dense group
    g = g_min
    best = g_min
    while g * 2 * d_model <= 1024 and g * 2 <= 128:
        g *= 2
        if M % g == 0 and M // g >= 8:
            best = g
    return best, g_min


def _block_vmem_bytes(rows, cols, itemsize):
    # Mosaic lays VMEM blocks out in (8, 128) tiles; account for that padding.
    return _round_up(max(rows, 1), 8) * _round_up(max(cols, 1), 128) * itemsize


def _time_feature_embed_kernel(x_ref, w_ref, o_ref):
    # x_ref: (tm_g, G*d_inp) grouped rows; w_ref: (G*d_inp, G*d_model) block-diag
    # kron(I_G, W.T); o_ref: (tm_g, G*d_model). One lane-dense MXU matmul, f32 acc.
    o_ref[...] = jnp.dot(
        x_ref[...], w_ref[...], preferred_element_type=jnp.float32
    ).astype(o_ref.dtype)


def _time_feature_embedding_pallas(x2d, w_t, out_dtype, tm, use_core_parallel):
    M, d_inp = x2d.shape
    d_model = w_t.shape[1]

    G, _ = _choose_group(d_model, M)

    # Rare fallback: only when even the minimal lane-dense group doesn't divide M.
    # Padded rows are zeros -> zero outputs, sliced off below (no garbage rows).
    M_pad = _round_up(M, G)
    if M_pad != M:
        x2d = jnp.pad(x2d, ((0, M_pad - M), (0, 0)))

    M_g = M_pad // G
    gk = G * d_inp
    gn = G * d_model

    # Contiguous (free) reshape: grouped layout is bit-identical to row-major.
    xg = x2d.reshape(M_g, gk)
    # Block-diagonal weight: row-group r of xg @ w_bd == [y[rG], ..., y[rG+G-1]].
    w_bd = jnp.kron(jnp.eye(G, dtype=w_t.dtype), w_t)          # (gk, gn), tiny

    # Tile over row-groups; large tiles so DMA dwarfs the ~0.35us per-step cost.
    default_tm_g = max(8, (max(tm, 8) // G) // 8 * 8)          # multiple of 8
    tm_g = M_g if M_g <= default_tm_g else default_tm_g        # or full extent
    grid = (pl.cdiv(M_g, tm_g),)   # last block may be partial -> masked DMA

    isz_in = jnp.dtype(xg.dtype).itemsize
    isz_out = jnp.dtype(out_dtype).itemsize
    vmem_need = (2 * _block_vmem_bytes(tm_g, gk, isz_in)        # x, double-buffered
                 + 2 * _block_vmem_bytes(tm_g, gn, isz_out)     # out, double-buffered
                 + _block_vmem_bytes(gk, gn, isz_in))           # resident weight
    vmem_limit = int(min(vmem_need + (8 << 20), 48 << 20))      # stays under v7x 64 MiB

    cost = pl.CostEstimate(
        flops=2 * M_pad * d_inp * d_model,
        transcendentals=0,
        bytes_accessed=(xg.size * isz_in + w_bd.size * isz_in
                        + M_pad * d_model * isz_out),
    )

    # CORE_PARALLEL actually shards grid steps across v7x's 2 TensorCores;
    # the string "parallel" is codegen-neutral but portable (single-TC v5e/v6e).
    dims = (pltpu.CORE_PARALLEL,) if use_core_parallel else ("parallel",)

    out = pl.pallas_call(
        _time_feature_embed_kernel,
        out_shape=jax.ShapeDtypeStruct((M_g, gn), out_dtype),
        grid_spec=pltpu.PrefetchScalarGridSpec(
            num_scalar_prefetch=0,
            grid=grid,
            in_specs=[
                pl.BlockSpec((tm_g, gk), lambda i: (i, 0)),   # grouped x tiles over M
                pl.BlockSpec((gk, gn), lambda i: (0, 0)),     # block-diag weight resident
            ],
            out_specs=pl.BlockSpec((tm_g, gn), lambda i: (i, 0)),
        ),
        compiler_params=pltpu.CompilerParams(
            dimension_semantics=dims,
            vmem_limit_bytes=vmem_limit,
        ),
        cost_estimate=cost,
    )(xg, w_bd)

    out2d = out.reshape(M_pad, d_model)       # free contiguous un-grouping
    return out2d[:M] if M_pad != M else out2d


def time_feature_embedding(x, weight, *, tm=16384, min_rows_for_pallas=8192,
                           out_dtype=None, force_pallas=False,
                           use_core_parallel=False):
    """TimeFeatureEmbedding forward: y = x @ weight.T (nn.Linear, no bias).

    x: (B, L, d_inp); weight: (d_model, d_inp) (PyTorch Linear layout).
    Returns (B, L, d_model) in out_dtype (defaults to x.dtype; pass bf16 to
    halve the dominant output HBM traffic — accumulation stays f32 in-kernel).
    """
    B, L, d_inp = x.shape
    d_model = weight.shape[0]
    M = B * L
    out_dtype = x.dtype if out_dtype is None else jnp.dtype(out_dtype)

    x2d = x.reshape(M, d_inp)
    w_t = weight.T.astype(x.dtype)            # (d_inp, d_model); <1 KiB transpose

    if M < min_rows_for_pallas and not force_pallas:
        # Small problems stay in XLA so they can fuse with the adjacent
        # value/temporal/positional embedding adds in TimesNet.
        out2d = jnp.dot(x2d, w_t, preferred_element_type=jnp.float32).astype(out_dtype)
    else:
        out2d = _time_feature_embedding_pallas(x2d, w_t, out_dtype, tm,
                                               use_core_parallel)

    return out2d.reshape(B, L, d_model)


if __name__ == "__main__":
    # Module config: freq='h' -> d_inp = 4; small d_model.
    d_inp = 4       # freq_map['h']
    d_model = 32

    key = jax.random.PRNGKey(0)
    k_x, k_w, k_x2 = jax.random.split(key, 3)

    # PyTorch Linear weight shape: (d_model, d_inp).
    weight = jax.random.normal(k_w, (d_model, d_inp), dtype=jnp.float32) * 0.1

    # --- Test 1: small demo shape forced through the Pallas path
    # (M=16 -> G=4 row-grouping, single (4, 128) lane-dense block).
    B, L = 2, 8
    x = jax.random.normal(k_x, (B, L, d_inp), dtype=jnp.float32)
    y = jax.block_until_ready(time_feature_embedding(x, weight, force_pallas=True))
    y_ref = jnp.einsum("bld,md->blm", x, weight)
    assert y.shape == (B, L, d_model)
    assert jnp.allclose(y, y_ref, atol=1e-5, rtol=1e-5)

    # --- Test 2: multi-tile pipelined path with a partial (masked) last block
    # (M=2000 -> G=16, M_g=125 groups; tm=1024 -> tm_g=64 -> grid of 2).
    B2, L2 = 4, 500
    x2 = jax.random.normal(k_x2, (B2, L2, d_inp), dtype=jnp.float32)
    y2 = jax.block_until_ready(
        time_feature_embedding(x2, weight, tm=1024, force_pallas=True))
    y2_ref = jnp.einsum("bld,md->blm", x2, weight)
    assert y2.shape == (B2, L2, d_model)
    assert jnp.allclose(y2, y2_ref, atol=1e-4, rtol=1e-4)

    print("KERNEL_OK")
</pallas_src>

<mosaic_0001>
module attributes {stable_mosaic.version = 11 : i64} {
  func.func @_time_feature_embed_kernel(%arg0: i32, %arg1: memref<4x16xf32, #tpu.memory_space<vmem>>, %arg2: memref<16x128xf32, #tpu.memory_space<vmem>>, %arg3: memref<4x128xf32, #tpu.memory_space<vmem>>) attributes {dimension_semantics = [#tpu.dimension_semantics<parallel>], iteration_bounds = array<i64: 1>, scalar_prefetch = 0 : i64, scratch_operands = 0 : i64, tpu.core_type = #tpu.core_type<tc>, window_params = [{transform_indices = @transform_0, window_bounds = array<i64: 4, 16>}, {pipeline_mode = #tpu.pipeline_mode<synchronous>, transform_indices = @transform_1, window_bounds = array<i64: 16, 128>}, {transform_indices = @transform_2, window_bounds = array<i64: 4, 128>}]} {
    %c0 = arith.constant 0 : index
    %c0_0 = arith.constant 0 : index
    %0 = vector.load %arg1[%c0, %c0_0] : memref<4x16xf32, #tpu.memory_space<vmem>>, vector<4x16xf32>
    %c0_1 = arith.constant 0 : index
    %c0_2 = arith.constant 0 : index
    %1 = vector.load %arg2[%c0_1, %c0_2] : memref<16x128xf32, #tpu.memory_space<vmem>>, vector<16x128xf32>
    %cst = arith.constant dense<0.000000e+00> : vector<4x128xf32>
    %2 = tpu.matmul %0, %1, %cst {dimension_numbers = #tpu.dot_dimension_numbers<[1], [0], [0], [1], [0, 0, 1, 1], [], []>} : vector<4x16xf32>, vector<16x128xf32>, vector<4x128xf32> -> vector<4x128xf32>
    %c0_3 = arith.constant 0 : index
    %c0_4 = arith.constant 0 : index
    %3 = vector.load %arg3[%c0_3, %c0_4] : memref<4x128xf32, #tpu.memory_space<vmem>>, vector<4x128xf32>
    tpu.vector_store %arg3[%c0_3, %c0_4], %2 {strides = array<i32>} : memref<4x128xf32, #tpu.memory_space<vmem>>, vector<4x128xf32>,
    return
  }
  func.func @transform_0(%arg0: i32) -> (i32, i32) {
    %c0_i32 = arith.constant 0 : i32
    %c0_i32_0 = arith.constant 0 : i32
    return %arg0, %c0_i32 : i32, i32
  }
  func.func @transform_1(%arg0: i32) -> (i32, i32) {
    %c0_i32 = arith.constant 0 : i32
    %c0_i32_0 = arith.constant 0 : i32
    %c0_i32_1 = arith.constant 0 : i32
    return %c0_i32, %c0_i32_0 : i32, i32
  }
  func.func @transform_2(%arg0: i32) -> (i32, i32) {
    %c0_i32 = arith.constant 0 : i32
    %c0_i32_0 = arith.constant 0 : i32
    return %arg0, %c0_i32 : i32, i32
  }
}

</mosaic_0001>

<bundles_post_ra>
// kernel: tpu_custom_call.1
= control target key start
LH: loop header
LB: loop body
LE: loop exit
PB: predicated region body
PF: predicated region fallthrough
CT: control target
= control target key end

     0   :  { %7 = vsyncpa [#allocation3], 0  ;;  %s292_s0 = inlined_call_operand.hbm [shape: f32[4,16], index: 0, kind: input, shape index: {}]   ;;  %s293_s1 = inlined_call_operand.hbm [shape: f32[16,128], index: 1, kind: input, shape index: {}]   ;;  %s294_s2 = inlined_call_operand.hbm [shape: f32[4,128], index: 2, kind: output, shape index: {}]  }
   0x1   :  { %8 = vsyncpa [#allocation6], 0 }
   0x2   :  { %9 = vsyncpa [#allocation4], 0  ;;  %s226_s9 = smov [#allocation2]   ;;  %s227_s11 = smov [#allocation5]  }
   0x3   :  { %s16_s10 = sshll.u32 %s226_s9, 4  ;;  %s25_s12 = sshll.u32 %s227_s11, 4  ;;  %s17_s10 = int_to_ptr.vmem [resolvable:$true] %s16_s10  ;;  %s249_s12 = int_to_ptr.vmem [resolvable:$true] %s25_s12 }
   0x4   :  { %s154_s15 = scalar_lea.hbm %s292_s0, 64 }
   0x5   :  { %p155_p0 = scmp.ne.s32.totalorder %s292_s0, %s154_s15  ;;  %p158_p1 = scmp.lt.u32.totalorder %s154_s15, %s292_s0 }
   0x7   :  { %p160_p2 = pnand %p158_p1, %p155_p0 }
   0x9   :  { %163 = shalt.err (!%p160_p2)
}
   0xa   :  { %s164_s20 = scalar_lea.vmem %s17_s10, 64  ;;  %p169_p4 = scmp.lt.s32.totalorder %s17_s10, %s17_s10 }
   0xb   :  { %p165_p3 = scmp.ne.s32.totalorder %s17_s10, %s164_s20  ;;  %p170_p5 = scmp.lt.s32.totalorder %s164_s20, %s164_s20 }
   0xd   :  { %p171_p6 = por %p170_p5, %p169_p4 }
   0xf   :  { %p172_p7 = pnand %p171_p6, %p165_p3 }
  0x11   :  { %175 = shalt.err (!%p172_p7)
}
  0x12   :  { %19 = dma.hbm_to_vmem [thread:$0]  %s292_s0, 64, %s17_s10, [#allocation3]  }
  0x13   :  { %s176_s25 = scalar_lea.hbm %s293_s1, 256 }
  0x14   :  { %p177_p8 = scmp.ne.s32.totalorder %s293_s1, %s176_s25  ;;  %p180_p9 = scmp.lt.u32.totalorder %s176_s25, %s293_s1 }
  0x16   :  { %p182_p10 = pnand %p180_p9, %p177_p8 }
  0x18   :  { %185 = shalt.err (!%p182_p10)
}
  0x19   :  { %s186_s30 = scalar_lea.vmem %s249_s12, 256  ;;  %p191_p12 = scmp.lt.s32.totalorder %s249_s12, %s249_s12 }
  0x1a   :  { %p187_p11 = scmp.ne.s32.totalorder %s249_s12, %s186_s30  ;;  %p192_p13 = scmp.lt.s32.totalorder %s186_s30, %s186_s30 }
  0x1c   :  { %p193_p0 = por %p192_p13, %p191_p12 }
  0x1e   :  { %p194_p1 = pnand %p193_p0, %p187_p11 }
  0x20   :  { %197 = shalt.err (!%p194_p1)
}
  0x21   :  { %s228_s0 = smov 128   ;;  %s229_s3 = smov 8  }
  0x22   :  { %31 = dma.hbm_to_vmem [thread:$0]  %s293_s1, 256, %s249_s12, [#allocation6], %s228_s0, %s228_s0, %s229_s3  }
  0x23   :  { %220 = dma.done.wait [#allocation3], 64  }
  0x24   :  { %221 = vsyncadd [#allocation3], 4294967232 }
  0x25   :  { %222 = dma.done.wait [#allocation6], 256  }
  0x26   :  { %223 = vsyncadd [#allocation6], 4294967040  ;;  %v230_v0 = vmov 0.0|0.0   ;;  %vm231_vm0 = vmmov 0   ;;  %v232_v1 = vmov 0.0   ;;  %v39_v2 = vld [vmem:[#allocation5] sm:$0xff] }
  0x27   :  { %143 = vmatprep.subr.bf16.mxu0 %v230_v0  ;;  %140 = vmatprep.mubr.msk.f32.mxu0 %vm231_vm0, %v232_v1  ;;  %v40_v3 = vld [vmem:[#allocation5 + $0x8] sm:$0xff]  ;;  %v38_v5 = vld [vmem:[#allocation2] sm:$0xf]  ;;  %vm41_vm1 = vcmask 130048   ;;  %s233_s6 = smov [#allocation7]  }
  0x28   :  { %v144_v4 = vpack.c.bf16 %v40_v3, %v39_v2  ;;  %s122_s7 = sshll.u32 %s233_s6, 4  ;;  %s123_s7 = int_to_ptr.vmem [resolvable:$true] %s122_s7 }
  0x29   :  { %s198_s1 = scalar_lea.vmem %s123_s7, 64  ;;  %p203_p3 = scmp.lt.s32.totalorder %s123_s7, %s123_s7 }
  0x2a   :  { %145 = vmatpush3.bf16.msra.mxu0 %v144_v4  ;;  %p199_p2 = scmp.ne.s32.totalorder %s123_s7, %s198_s1  ;;  %p204_p4 = scmp.lt.s32.totalorder %s198_s1, %s198_s1 }
  0x2c   :  { %p205_p5 = por %p204_p4, %p203_p3 }
  0x2d   :  { %141 = vmatmul.mubr.msk.f32.vlgmr.msra.gmra.mrb[0].mxu0 %vm41_vm1, %v38_v5 }
  0x2e   :  { %p206_p6 = pnand %p205_p5, %p199_p2 }
 0x100   :  { %v111_v6 = vpop.f32.mrb[0].mxu0 }
 0x101   :  { %115 = vst [vmem:[#allocation7] sm:$0xf] %v111_v6  ;;  %v142_v7 = vpop.f32.mrb[1].mxu0 }
 0x102   :  { %209 = shalt.err (!%p206_p6)
}
 0x103   :  { %s210_s10 = scalar_lea.hbm %s294_s2, 64 }
 0x104   :  { %p211_p7 = scmp.ne.s32.totalorder %s294_s2, %s210_s10  ;;  %p214_p8 = scmp.lt.u32.totalorder %s210_s10, %s294_s2 }
 0x106   :  { %p216_p9 = pnand %p214_p8, %p211_p7 }
 0x108   :  { %219 = shalt.err (!%p216_p9)
}
 0x109   :  { %125 = dma.vmem_to_hbm [thread:$0]  %s123_s7, 64, %s294_s2, [#allocation4]  }
 0x10a   :  { %224 = dma.done.wait [#allocation4], 64  }
 0x10b   :  { %225 = vsyncadd [#allocation4], 4294967232 }
 0x10c   :  { %129 = vsyncpa [#allocation3], 1 }
 0x10d   :  { %130 = vsyncpa [#allocation6], 1 }
 0x10e   :  { %131 = vsyncpa [#allocation4], 1 }

</bundles_post_ra>
